<compile_context>
chip_gen: v7x
topology: tpu7x:2x2x1
jax: 0.10.0
libtpu: 0.0.40
codegen_flags: <defaults>
</compile_context>

<pallas_src>
import math
from functools import partial

import jax
import jax.numpy as jnp
import numpy as np
from jax.experimental import pallas as pl
from jax.experimental.pallas import tpu as pltpu


def _round_up(x, m):
    return ((x + m - 1) // m) * m


# ------------------------------ linear layers -------------------------------

def _linear_kernel(x_ref, w_ref, b_ref, o_ref):
    # y = x @ w + b  (w already transposed to (K, N), b is (1, N)).
    # K = d_model is tiny, so these are bandwidth bound -> keep f32 operands
    # (accuracy-critical projections); output may be stored in bf16.
    o_ref[...] = (jnp.dot(x_ref[...], w_ref[...],
                          preferred_element_type=jnp.float32)
                  + b_ref[...]).astype(o_ref.dtype)


def pallas_linear(x, w, b, *, block_m=1024, out_dtype=jnp.float32):
    """x: (M, K) f32, w: (out, K) (torch nn.Linear layout), b: (out,) -> (M, out)."""
    M, K = x.shape
    out_dim = w.shape[0]
    bm = min(block_m, _round_up(M, 16))
    M_pad = _round_up(M, bm)
    xp = x if M_pad == M else jnp.pad(x, ((0, M_pad - M), (0, 0)))
    y = pl.pallas_call(
        _linear_kernel,
        grid=(M_pad // bm,),
        in_specs=[
            pl.BlockSpec((bm, K), lambda i: (i, 0)),
            pl.BlockSpec((K, out_dim), lambda i: (0, 0)),
            pl.BlockSpec((1, out_dim), lambda i: (0, 0)),
        ],
        out_specs=pl.BlockSpec((bm, out_dim), lambda i: (i, 0)),
        out_shape=jax.ShapeDtypeStruct((M_pad, out_dim), out_dtype),
        compiler_params=pltpu.CompilerParams(dimension_semantics=("parallel",)),
    )(xp.astype(jnp.float32), jnp.transpose(w).astype(jnp.float32),
      b.reshape(1, out_dim).astype(jnp.float32))
    return y[:M]


# ------------------------------- core kernel --------------------------------

def _msda_core_kernel(value_ref, samp_ref, ref_ref, geom_ref, opw_ref, opb_ref,
                      out_ref, *, spatial_shapes, n_heads, n_levels, n_points,
                      d_head):
    block_q = samp_ref.shape[0]
    LP = n_levels * n_points
    HLP = n_heads * LP

    # value arrives in bf16 (halves HBM->VMEM bytes); one upcast per tile keeps
    # the comb @ value contraction in f32 for parity with the f32 reference.
    v = value_ref[...].astype(jnp.float32)           # (Len_in, d_model)
    samp = samp_ref[...]                              # (bq, 3*HLP)
    refs = ref_ref[...]                               # (bq, 2*HLP)

    off_x = samp[:, 0:HLP]                 # already scaled by 1/normalizer
    off_y = samp[:, HLP:2 * HLP]
    logits = samp[:, 2 * HLP:3 * HLP]
    loc_x = refs[:, 0:HLP] + off_x         # fused loc = ref + off/normalizer
    loc_y = refs[:, HLP:2 * HLP] + off_y

    geom = geom_ref[...]                   # per-tap level geometry (input, not
    w_tap = geom[0:1, :]                   #  a captured constant)
    h_tap = geom[1:2, :]
    w_tap_i = w_tap.astype(jnp.int32)

    # ---- per-head softmax: exp/mul lane-dense over the full (bq, HLP) ------
    m_parts = []
    for h in range(n_heads):
        m_h = jnp.max(logits[:, h * LP:(h + 1) * LP], axis=-1, keepdims=True)
        m_parts.append(jnp.broadcast_to(m_h, (block_q, LP)))
    e = jnp.exp(logits - jnp.concatenate(m_parts, axis=-1))
    inv_parts = []
    for h in range(n_heads):
        s_h = jnp.sum(e[:, h * LP:(h + 1) * LP], axis=-1, keepdims=True)
        inv_parts.append(jnp.broadcast_to(pl.reciprocal(s_h, approx=True),
                                          (block_q, LP)))
    attn = e * jnp.concatenate(inv_parts, axis=-1)    # (bq, HLP)

    # ---- bilinear geometry, vectorized over all heads*levels*points --------
    # grid_sample(align_corners=False): pixel = loc * size - 0.5
    x = loc_x * w_tap - 0.5
    y = loc_y * h_tap - 0.5
    x0 = jnp.floor(x)
    y0 = jnp.floor(y)

    cw = []   # attn * bilinear weight * in-bounds mask, (bq, HLP) f32
    ci = []   # flat index within the tap's own level,    (bq, HLP) i32
    for dy in (0, 1):
        for dx in (0, 1):
            xi = x0 + dx
            yi = y0 + dy
            wgt = (1.0 - jnp.abs(x - xi)) * (1.0 - jnp.abs(y - yi))
            valid = ((xi >= 0.0) & (xi <= w_tap - 1.0) &
                     (yi >= 0.0) & (yi <= h_tap - 1.0)).astype(jnp.float32)
            xi_c = jnp.clip(xi, 0.0, w_tap - 1.0).astype(jnp.int32)
            yi_c = jnp.clip(yi, 0.0, h_tap - 1.0).astype(jnp.int32)
            cw.append(attn * wgt * valid)              # attn folded in once
            ci.append(yi_c * w_tap_i + xi_c)

    # one column iota per level, shared by all heads (JAX does not CSE these)
    col_iotas = [jax.lax.broadcasted_iota(jnp.int32, (block_q, Hl * Wl), 1)
                 for (Hl, Wl) in spatial_shapes]

    # ---- per head: sparse per-level comb, one K=Len_in MXU matmul per head --
    head_out = []
    for h in range(n_heads):
        comb_parts = []
        for l, (Hl, Wl) in enumerate(spatial_shapes):
            HW = Hl * Wl
            col = col_iotas[l]
            comb_l = jnp.zeros((block_q, HW), jnp.float32)
            for p in range(n_points):
                c = h * LP + l * n_points + p
                for k in range(4):
                    comb_l = comb_l + jnp.where(col == ci[k][:, c:c + 1],
                                                cw[k][:, c:c + 1], 0.0)
            comb_parts.append(comb_l)
        comb = jnp.concatenate(comb_parts, axis=-1)    # (bq, Len_in)
        head_out.append(jnp.dot(comb, v[:, h * d_head:(h + 1) * d_head],
                                preferred_element_type=jnp.float32))

    attn_out = jnp.concatenate(head_out, axis=-1)      # (bq, d_model)
    # fused output projection (weights resident in VMEM), single lane-dense store
    out_ref[...] = (jnp.dot(attn_out, opw_ref[...],
                            preferred_element_type=jnp.float32)
                    + opb_ref[...]).astype(out_ref.dtype)


def msda_core(value, samp, ref_tap, spatial_shapes_np, n_heads, n_levels,
              n_points, op_w, op_b, *, block_q=128):
    """value: (N, Len_in, d_model) bf16; samp: (N, Len_q, 3*HLP) f32
    [off_x|off_y|logits]; ref_tap: (N, Len_q, 2*HLP) f32. Returns the final
    projected output (N, Len_q, d_model) f32."""
    N, Len_in, d_model = value.shape
    Len_q = samp.shape[1]
    HLP = n_heads * n_levels * n_points
    d_head = d_model // n_heads

    bq = min(block_q, _round_up(Len_q, 8))
    Lq_pad = _round_up(Len_q, bq)
    if Lq_pad != Len_q:
        pad = ((0, 0), (0, Lq_pad - Len_q), (0, 0))
        samp = jnp.pad(samp, pad)
        ref_tap = jnp.pad(ref_tap, pad)

    spatial = tuple((int(h), int(w)) for h, w in np.asarray(spatial_shapes_np))

    # per-tap level geometry (head-major tap order) passed as a real input so
    # the kernel does not capture array constants.
    W_lvl = np.asarray([w for (_, w) in spatial], np.float32)
    H_lvl = np.asarray([h for (h, _) in spatial], np.float32)
    geom = np.zeros((8, HLP), np.float32)
    geom[0] = np.tile(np.repeat(W_lvl, n_points), n_heads)
    geom[1] = np.tile(np.repeat(H_lvl, n_points), n_heads)
    geom = jnp.asarray(geom)

    kernel = partial(_msda_core_kernel, spatial_shapes=spatial,
                     n_heads=n_heads, n_levels=n_levels, n_points=n_points,
                     d_head=d_head)

    q_tiles = Lq_pad // bq
    cost = pl.CostEstimate(
        flops=int(2 * N * Lq_pad * (Len_in + d_model) * d_model),
        transcendentals=int(N * Lq_pad * HLP),
        bytes_accessed=int(N * q_tiles * Len_in * d_model * value.dtype.itemsize
                           + N * Lq_pad * 5 * HLP * 4
                           + N * Lq_pad * d_model * 4))

    # TODO(synk): at production sizes single-buffer the value block
    # (pipeline_mode=pl.Buffered(1)) or DMA per-level slices manually.
    out = pl.pallas_call(
        kernel,
        grid=(N, q_tiles),
        in_specs=[
            pl.BlockSpec((None, Len_in, d_model), lambda b, q: (b, 0, 0)),
            pl.BlockSpec((None, bq, 3 * HLP), lambda b, q: (b, q, 0)),
            pl.BlockSpec((None, bq, 2 * HLP), lambda b, q: (b, q, 0)),
            pl.BlockSpec((8, HLP), lambda b, q: (0, 0)),
            pl.BlockSpec((d_model, d_model), lambda b, q: (0, 0)),
            pl.BlockSpec((1, d_model), lambda b, q: (0, 0)),
        ],
        out_specs=pl.BlockSpec((None, bq, d_model), lambda b, q: (b, q, 0)),
        out_shape=jax.ShapeDtypeStruct((N, Lq_pad, d_model), jnp.float32),
        compiler_params=pltpu.CompilerParams(
            dimension_semantics=("parallel", "parallel"),
            vmem_limit_bytes=64 * 1024 * 1024),
        cost_estimate=cost,
    )(value, samp.astype(jnp.float32), ref_tap.astype(jnp.float32), geom,
      jnp.transpose(op_w).astype(jnp.float32),
      op_b.reshape(1, d_model).astype(jnp.float32))
    return out[:, :Len_q]


# --------------------------- parameter initialization -----------------------

def init_msdeform_attn_params(d_model=32, n_levels=4, n_heads=4, n_points=4,
                              seed=0):
    assert d_model % n_heads == 0
    key = jax.random.PRNGKey(seed)
    k1, k2 = jax.random.split(key)

    # sampling_offsets: weight = 0, bias = directional grid (as _reset_parameters)
    so_w = jnp.zeros((n_heads * n_levels * n_points * 2, d_model), jnp.float32)
    thetas = jnp.arange(n_heads, dtype=jnp.float32) * (2.0 * math.pi / n_heads)
    grid_init = jnp.stack([jnp.cos(thetas), jnp.sin(thetas)], axis=-1)       # (H,2)
    grid_init = grid_init / jnp.max(jnp.abs(grid_init), axis=-1, keepdims=True)
    grid_init = jnp.tile(grid_init[:, None, None, :], (1, n_levels, n_points, 1))
    grid_init = grid_init * (jnp.arange(n_points, dtype=jnp.float32) + 1.0
                             )[None, None, :, None]
    so_b = grid_init.reshape(-1)

    # attention_weights: zeros
    aw_w = jnp.zeros((n_heads * n_levels * n_points, d_model), jnp.float32)
    aw_b = jnp.zeros((n_heads * n_levels * n_points,), jnp.float32)

    # value_proj / output_proj: xavier_uniform weight, zero bias
    bound = math.sqrt(6.0 / (d_model + d_model))
    vp_w = jax.random.uniform(k1, (d_model, d_model), jnp.float32, -bound, bound)
    vp_b = jnp.zeros((d_model,), jnp.float32)
    op_w = jax.random.uniform(k2, (d_model, d_model), jnp.float32, -bound, bound)
    op_b = jnp.zeros((d_model,), jnp.float32)

    return dict(so_w=so_w, so_b=so_b, aw_w=aw_w, aw_b=aw_b,
                vp_w=vp_w, vp_b=vp_b, op_w=op_w, op_b=op_b,
                d_model=d_model, n_levels=n_levels, n_heads=n_heads,
                n_points=n_points)


# --------------------------------- forward ----------------------------------

def ms_deform_attn_forward(params, query, reference_points, input_flatten,
                           input_spatial_shapes, input_level_start_index,
                           input_padding_mask=None):
    d_model = params['d_model']
    L, H, P = params['n_levels'], params['n_heads'], params['n_points']
    HLP = H * L * P
    N, Len_q, _ = query.shape
    _, Len_in, _ = input_flatten.shape
    ss_np = np.asarray(input_spatial_shapes)
    assert int(np.sum(ss_np[:, 0] * ss_np[:, 1])) == Len_in

    if reference_points.shape[-1] != 2:
        # TODO(synk): reference_points with last dim 4 (box form) not implemented.
        raise ValueError("only 2-d reference points supported in this kernel")

    # value projection emitted directly in bf16 (half the core-kernel DMA
    # bytes); padding-mask fill stays a cheap elementwise XLA op.
    value = pallas_linear(input_flatten.reshape(N * Len_in, d_model),
                          params['vp_w'], params['vp_b'],
                          out_dtype=jnp.bfloat16).reshape(N, Len_in, d_model)
    if input_padding_mask is not None:
        value = jnp.where(input_padding_mask[..., None], 0.0, value)

    # Fused sampling_offsets + attention_weights projection. Weight rows are
    # permuted so the output is lane-packed as [off_x | off_y | logits] per tap
    # (head-major), and the offset rows/bias are pre-scaled by 1/normalizer, so
    # no elementwise pass over (N, Len_q, 2*HLP) is needed before the core.
    inv_norm = jnp.asarray(np.stack([1.0 / ss_np[:, 1], 1.0 / ss_np[:, 0]],
                                    axis=-1).astype(np.float32))      # (L, 2)
    so_w_s = (params['so_w'].reshape(H, L, P, 2, d_model)
              * inv_norm[None, :, None, :, None])
    so_b_s = params['so_b'].reshape(H, L, P, 2) * inv_norm[None, :, None, :]
    soaw_w = jnp.concatenate([so_w_s[:, :, :, 0, :].reshape(HLP, d_model),
                              so_w_s[:, :, :, 1, :].reshape(HLP, d_model),
                              params['aw_w']], axis=0)
    soaw_b = jnp.concatenate([so_b_s[:, :, :, 0].reshape(HLP),
                              so_b_s[:, :, :, 1].reshape(HLP),
                              params['aw_b']], axis=0)
    samp = pallas_linear(query.reshape(N * Len_q, d_model), soaw_w, soaw_b
                         ).reshape(N, Len_q, 3 * HLP)

    # reference points broadcast to the per-tap (head-major) layout; loc math,
    # softmax, bilinear sampling and output_proj all happen inside the core.
    ref = reference_points.astype(jnp.float32)                  # (N, Lq, L, 2)
    ref_x = jnp.broadcast_to(ref[:, :, None, :, None, 0],
                             (N, Len_q, H, L, P)).reshape(N, Len_q, HLP)
    ref_y = jnp.broadcast_to(ref[:, :, None, :, None, 1],
                             (N, Len_q, H, L, P)).reshape(N, Len_q, HLP)
    ref_tap = jnp.concatenate([ref_x, ref_y], axis=-1)          # (N, Lq, 2*HLP)

    return msda_core(value, samp, ref_tap, ss_np, H, L, P,
                     params['op_w'], params['op_b'])


# ----------------------------- pure-JAX reference ----------------------------

def reference_forward(params, query, reference_points, input_flatten,
                      spatial_shapes, level_start_index, padding_mask=None):
    d_model = params['d_model']
    L, M, P = params['n_levels'], params['n_heads'], params['n_points']
    dh = d_model // M
    N, Len_q, _ = query.shape
    _, Len_in, _ = input_flatten.shape

    value = input_flatten @ params['vp_w'].T + params['vp_b']
    if padding_mask is not None:
        value = jnp.where(padding_mask[..., None], 0.0, value)
    value = value.reshape(N, Len_in, M, dh)

    offsets = (query @ params['so_w'].T + params['so_b']).reshape(N, Len_q, M, L, P, 2)
    aw = (query @ params['aw_w'].T + params['aw_b']).reshape(N, Len_q, M, L * P)
    aw = jax.nn.softmax(aw, axis=-1).reshape(N, Len_q, M, L, P)

    offset_normalizer = jnp.stack([spatial_shapes[:, 1], spatial_shapes[:, 0]],
                                  -1).astype(jnp.float32)
    loc = (reference_points[:, :, None, :, None, :]
           + offsets / offset_normalizer[None, None, None, :, None, :])

    ss_np = np.asarray(spatial_shapes)
    start_np = np.asarray(level_start_index)
    out_acc = jnp.zeros((N, Len_q, M, dh), jnp.float32)
    for l in range(L):
        Hl, Wl = int(ss_np[l, 0]), int(ss_np[l, 1])
        s = int(start_np[l])
        v_l = value[:, s:s + Hl * Wl]                       # (N, Hl*Wl, M, dh)
        x = loc[:, :, :, l, :, 0] * Wl - 0.5                # (N, Lq, M, P)
        y = loc[:, :, :, l, :, 1] * Hl - 0.5
        x0 = jnp.floor(x)
        y0 = jnp.floor(y)
        for dy in (0, 1):
            for dx in (0, 1):
                xi = x0 + dx
                yi = y0 + dy
                wgt = (1 - jnp.abs(x - xi)) * (1 - jnp.abs(y - yi))
                valid = ((xi >= 0) & (xi <= Wl - 1) &
                         (yi >= 0) & (yi <= Hl - 1)).astype(jnp.float32)
                xi_c = jnp.clip(xi, 0, Wl - 1).astype(jnp.int32)
                yi_c = jnp.clip(yi, 0, Hl - 1).astype(jnp.int32)
                idx = yi_c * Wl + xi_c                       # (N, Lq, M, P)
                g = v_l[jnp.arange(N)[:, None, None, None], idx,
                        jnp.arange(M)[None, None, :, None], :]  # (N,Lq,M,P,dh)
                out_acc = out_acc + jnp.sum(
                    (wgt * valid * aw[:, :, :, l, :])[..., None] * g, axis=3)
    out = out_acc.reshape(N, Len_q, d_model)
    return out @ params['op_w'].T + params['op_b']


# ------------------------------------ main -----------------------------------

if __name__ == "__main__":
    d_model, n_levels, n_heads, n_points = 32, 4, 4, 4
    spatial = [(6, 6), (4, 4), (3, 3), (2, 2)]
    Len_in = sum(h * w for h, w in spatial)     # 65
    N, Len_q = 2, 8

    spatial_shapes = jnp.array(spatial, dtype=jnp.int32)
    sizes = [h * w for h, w in spatial]
    level_start_index = jnp.array(
        np.concatenate([[0], np.cumsum(sizes)[:-1]]), dtype=jnp.int32)

    params = init_msdeform_attn_params(d_model, n_levels, n_heads, n_points, seed=0)

    key = jax.random.PRNGKey(0)
    kq, kr, kf, km, kp1, kp2 = jax.random.split(key, 6)
    # small perturbation on the (zero-initialized) offset / attention weights so
    # the softmax + sampling paths are exercised non-trivially by the test.
    params['so_w'] = params['so_w'] + 0.05 * jax.random.normal(
        kp1, params['so_w'].shape, jnp.float32)
    params['aw_w'] = params['aw_w'] + 0.10 * jax.random.normal(
        kp2, params['aw_w'].shape, jnp.float32)

    query = jax.random.normal(kq, (N, Len_q, d_model), jnp.float32)
    reference_points = jax.random.uniform(kr, (N, Len_q, n_levels, 2), jnp.float32)
    input_flatten = jax.random.normal(kf, (N, Len_in, d_model), jnp.float32)
    padding_mask = jax.random.uniform(km, (N, Len_in)) < 0.1

    out = ms_deform_attn_forward(params, query, reference_points, input_flatten,
                                 spatial_shapes, level_start_index, padding_mask)
    out = jax.block_until_ready(out)

    ref = jax.block_until_ready(
        reference_forward(params, query, reference_points, input_flatten,
                          spatial_shapes, level_start_index, padding_mask))
    # bf16 value storage + approx EUP reciprocal in the softmax -> compare at
    # bf16-level tolerance (the comb/value contraction itself accumulates f32).
    np.testing.assert_allclose(np.asarray(out), np.asarray(ref),
                               rtol=2e-2, atol=2e-2)
    print("KERNEL_OK")
</pallas_src>

<mosaic_0001>
module attributes {stable_mosaic.version = 11 : i64} {
  func.func @_linear_kernel(%arg0: i32, %arg1: memref<144x32xf32, #tpu.memory_space<vmem>>, %arg2: memref<32x32xf32, #tpu.memory_space<vmem>>, %arg3: memref<1x32xf32, #tpu.memory_space<vmem>>, %arg4: memref<144x32xbf16, #tpu.memory_space<vmem>>) attributes {dimension_semantics = [#tpu.dimension_semantics<parallel>], iteration_bounds = array<i64: 1>, scalar_prefetch = 0 : i64, scratch_operands = 0 : i64, tpu.core_type = #tpu.core_type<tc>, window_params = [{transform_indices = @transform_0, window_bounds = array<i64: 144, 32>}, {pipeline_mode = #tpu.pipeline_mode<synchronous>, transform_indices = @transform_1, window_bounds = array<i64: 32, 32>}, {pipeline_mode = #tpu.pipeline_mode<synchronous>, transform_indices = @transform_2, window_bounds = array<i64: 1, 32>}, {transform_indices = @transform_3, window_bounds = array<i64: 144, 32>}]} {
    %c0 = arith.constant 0 : index
    %c0_0 = arith.constant 0 : index
    %0 = vector.load %arg1[%c0, %c0_0] : memref<144x32xf32, #tpu.memory_space<vmem>>, vector<144x32xf32>
    %c0_1 = arith.constant 0 : index
    %c0_2 = arith.constant 0 : index
    %1 = vector.load %arg2[%c0_1, %c0_2] : memref<32x32xf32, #tpu.memory_space<vmem>>, vector<32x32xf32>
    %cst = arith.constant dense<0.000000e+00> : vector<144x32xf32>
    %2 = tpu.matmul %0, %1, %cst {dimension_numbers = #tpu.dot_dimension_numbers<[1], [0], [0], [1], [0, 0, 1, 1], [], []>} : vector<144x32xf32>, vector<32x32xf32>, vector<144x32xf32> -> vector<144x32xf32>
    %c0_3 = arith.constant 0 : index
    %c0_4 = arith.constant 0 : index
    %3 = vector.load %arg3[%c0_3, %c0_4] : memref<1x32xf32, #tpu.memory_space<vmem>>, vector<1x32xf32>
    %4 = vector.broadcast %3 : vector<1x32xf32> to vector<144x32xf32>
    %5 = arith.addf %2, %4 : vector<144x32xf32>
    %6 = arith.truncf %5 : vector<144x32xf32> to vector<144x32xbf16>
    %c0_5 = arith.constant 0 : index
    %c0_6 = arith.constant 0 : index
    %7 = vector.load %arg4[%c0_5, %c0_6] : memref<144x32xbf16, #tpu.memory_space<vmem>>, vector<144x32xbf16>
    tpu.vector_store %arg4[%c0_5, %c0_6], %6 {strides = array<i32>} : memref<144x32xbf16, #tpu.memory_space<vmem>>, vector<144x32xbf16>,
    return
  }
  func.func @transform_0(%arg0: i32) -> (i32, i32) {
    %c0_i32 = arith.constant 0 : i32
    %c0_i32_0 = arith.constant 0 : i32
    return %arg0, %c0_i32 : i32, i32
  }
  func.func @transform_1(%arg0: i32) -> (i32, i32) {
    %c0_i32 = arith.constant 0 : i32
    %c0_i32_0 = arith.constant 0 : i32
    %c0_i32_1 = arith.constant 0 : i32
    return %c0_i32, %c0_i32_0 : i32, i32
  }
  func.func @transform_2(%arg0: i32) -> (i32, i32) {
    %c0_i32 = arith.constant 0 : i32
    %c0_i32_0 = arith.constant 0 : i32
    %c0_i32_1 = arith.constant 0 : i32
    return %c0_i32, %c0_i32_0 : i32, i32
  }
  func.func @transform_3(%arg0: i32) -> (i32, i32) {
    %c0_i32 = arith.constant 0 : i32
    %c0_i32_0 = arith.constant 0 : i32
    return %arg0, %c0_i32 : i32, i32
  }
}

</mosaic_0001>

<bundles_post_ra>
// kernel: tpu_custom_call.1
= control target key start
LH: loop header
LB: loop body
LE: loop exit
PB: predicated region body
PF: predicated region fallthrough
CT: control target
= control target key end

     0   :  { %vm43_vm0 = vcmask 261120   ;;  %vm325_vm1 = vcmask 257024   ;;  %s671_s1 = inlined_call_operand.vmem [shape: f32[32,32], index: 1, kind: input, shape index: {}]   ;;  %s672_s0 = inlined_call_operand.vmem [shape: f32[144,32], index: 0, kind: input, shape index: {}]   ;;  %s673_s2 = inlined_call_operand.vmem [shape: f32[1,32], index: 2, kind: input, shape index: {}]   ;;  %s674_s3 = inlined_call_operand.vmem [shape: bf16[144,32], index: 3, kind: output, shape index: {}]  }
   0x1   :  { %v32_v0 = vld [vmem:[%s671_s1] sm:$0xff]  ;;  %v33_v1 = vld [vmem:[%s671_s1 + $0x8] sm:$0xff]  ;;  %v34_v2 = vld [vmem:[%s671_s1 + $0x10] sm:$0xff] }
   0x2   :  { %v460_v3 = vpack.c.bf16 %v33_v1, %v32_v0  ;;  %v35_v4 = vld [vmem:[%s671_s1 + $0x18] sm:$0xff]  ;;  %v14_v5 = vld [vmem:[%s672_s0] sm:$0xff]  ;;  %v24_v7 = vld [vmem:[%s672_s0 + $0x50] sm:$0xff] }
   0x3   :  { %v464_v6 = vpack.c.bf16 %v35_v4, %v34_v2  ;;  %433 = vmatprep.mubr.msk.f32.mxu0 %vm43_vm0, %v14_v5  ;;  %448 = vmatprep.mubr.msk.f32.mxu1 %vm43_vm0, %v24_v7  ;;  %v15_v8 = vld [vmem:[%s672_s0 + $0x8] sm:$0xff]  ;;  %v25_v9 = vld [vmem:[%s672_s0 + $0x58] sm:$0xff]  ;;  %v16_v10 = vld [vmem:[%s672_s0 + $0x10] sm:$0xff] }
   0x4   :  { %461 = vmatprep.subr.bf16.mxu0 %v460_v3  ;;  %468 = vmatprep.subr.bf16.mxu1 %v460_v3  ;;  %v26_v11 = vld [vmem:[%s672_s0 + $0x60] sm:$0xff]  ;;  %v17_v12 = vld [vmem:[%s672_s0 + $0x18] sm:$0xff]  ;;  %v27_v13 = vld [vmem:[%s672_s0 + $0x68] sm:$0xff] }
   0x5   :  { %463 = vmatpush3.bf16.msra.mxu0 %v460_v3  ;;  %470 = vmatpush3.bf16.msra.mxu1 %v460_v3  ;;  %v18_v14 = vld [vmem:[%s672_s0 + $0x20] sm:$0xff]  ;;  %v28_v15 = vld [vmem:[%s672_s0 + $0x70] sm:$0xff]  ;;  %v19_v16 = vld [vmem:[%s672_s0 + $0x28] sm:$0xff] }
   0x6   :  { %465 = vmatprep.subr.bf16.mxu0 %v464_v6  ;;  %469 = vmatprep.subr.bf16.mxu1 %v464_v6  ;;  %v29_v17 = vld [vmem:[%s672_s0 + $0x78] sm:$0xff]  ;;  %v20_v18 = vld [vmem:[%s672_s0 + $0x30] sm:$0xff]  ;;  %v30_v19 = vld [vmem:[%s672_s0 + $0x80] sm:$0xff] }
   0x7   :  { %v21_v20 = vld [vmem:[%s672_s0 + $0x38] sm:$0xff]  ;;  %v31_v21 = vld [vmem:[%s672_s0 + $0x88] sm:$0xff]  ;;  %v22_v22 = vld [vmem:[%s672_s0 + $0x40] sm:$0xff] }
   0x8   :  { %v23_v23 = vld [vmem:[%s672_s0 + $0x48] sm:$0xff]  ;;  %v579_v24 = vld [vmem:[%s673_s2] ss:$0 sm:$0xff] }
   0x9   :  { %467 = vmatpush3.bf16.msra.mxu0 %v464_v6  ;;  %471 = vmatpush3.bf16.msra.mxu1 %v464_v6 }
   0xc   :  { %434 = vmatmul.mubr.msk.f32.vlgmr.msra.gmra.mrb[0].mxu0 %vm43_vm0, %v15_v8  ;;  %449 = vmatmul.mubr.msk.f32.vlgmr.msra.gmra.mrb[0].mxu1 %vm43_vm0, %v25_v9 }
   0xd   :  { %436 = vmatprep.mubr.msk.f32.mxu0 %vm43_vm0, %v16_v10  ;;  %451 = vmatprep.mubr.msk.f32.mxu1 %vm43_vm0, %v26_v11 }
  0x10   :  { %437 = vmatmul.mubr.msk.f32.gmra.mrb[2].mxu0 %vm43_vm0, %v17_v12  ;;  %452 = vmatmul.mubr.msk.f32.gmra.mrb[2].mxu1 %vm43_vm0, %v27_v13 }
  0x11   :  { %439 = vmatprep.mubr.msk.f32.mxu0 %vm43_vm0, %v18_v14  ;;  %454 = vmatprep.mubr.msk.f32.mxu1 %vm43_vm0, %v28_v15 }
  0x14   :  { %440 = vmatmul.mubr.msk.f32.gmra.mrb[4].mxu0 %vm43_vm0, %v19_v16  ;;  %455 = vmatmul.mubr.msk.f32.gmra.mrb[4].mxu1 %vm43_vm0, %v29_v17 }
  0x15   :  { %442 = vmatprep.mubr.msk.f32.mxu0 %vm43_vm0, %v20_v18  ;;  %457 = vmatprep.mubr.msk.f32.mxu1 %vm43_vm0, %v30_v19 }
  0x18   :  { %443 = vmatmul.mubr.msk.f32.gmra.mrb[6].mxu0 %vm43_vm0, %v21_v20  ;;  %458 = vmatmul.mubr.msk.f32.gmra.mrb[6].mxu1 %vm43_vm0, %v31_v21 }
  0x19   :  { %445 = vmatprep.mubr.msk.f32.mxu0 %vm43_vm0, %v22_v22 }
  0x1c   :  { %446 = vmatmul.mubr.msk.f32.gmra.mrb[8].mxu0 %vm43_vm0, %v23_v23 }
  0xdf   :  { %v435_v25 = vpop.f32.mrb[0].mxu0  ;;  %v450_v26 = vpop.f32.mrb[0].mxu1 }
  0xe0   :  { %v170_v27 = vadd.f32 %v435_v25, %v579_v24  ;;  %v164_v28 = vpop.f32.mrb[1].mxu0  ;;  %v220_v29 = vadd.f32 %v450_v26, %v579_v24  ;;  %v214_v30 = vpop.f32.mrb[1].mxu1 }
  0xe1   :  { %v165_v31 = vadd.f32 %v579_v24, %v164_v28  ;;  %v215_v32 = vadd.f32 %v579_v24, %v214_v30 }
  0xe2   :  { %v386_v33 = vpack.c.bf16 %v170_v27, %v170_v27  ;;  %v396_v34 = vpack.c.bf16 %v220_v29, %v220_v29 }
  0xe3   :  { %v385_v35 = vpack.c.bf16 %v165_v31, %v165_v31  ;;  %v438_v36 = vpop.f32.mrb[2].mxu0  ;;  %v395_v37 = vpack.c.bf16 %v215_v32, %v215_v32  ;;  %v453_v38 = vpop.f32.mrb[2].mxu1 }
  0xe4   :  { %327 = vst.msk [vmem:[%s674_s3 + $0x4] sm:$0xf] %vm325_vm1, %v386_v33  ;;  %337 = vst.msk [vmem:[%s674_s3 + $0x2c] sm:$0xf] %vm325_vm1, %v396_v34  ;;  %v180_v39 = vadd.f32 %v438_v36, %v579_v24  ;;  %v174_v40 = vpop.f32.mrb[3].mxu0  ;;  %v230_v41 = vadd.f32 %v453_v38, %v579_v24  ;;  %v224_v42 = vpop.f32.mrb[3].mxu1 }
  0xe5   :  { %326 = vst.msk [vmem:[%s674_s3] sm:$0xf] %vm325_vm1, %v385_v35  ;;  %336 = vst.msk [vmem:[%s674_s3 + $0x28] sm:$0xf] %vm325_vm1, %v395_v37  ;;  %v175_v43 = vadd.f32 %v579_v24, %v174_v40  ;;  %v225_v44 = vadd.f32 %v579_v24, %v224_v42 }
  0xe6   :  { %v388_v45 = vpack.c.bf16 %v180_v39, %v180_v39  ;;  %v398_v46 = vpack.c.bf16 %v230_v41, %v230_v41 }
  0xe7   :  { %v387_v47 = vpack.c.bf16 %v175_v43, %v175_v43  ;;  %v441_v48 = vpop.f32.mrb[4].mxu0  ;;  %v397_v49 = vpack.c.bf16 %v225_v44, %v225_v44  ;;  %v456_v50 = vpop.f32.mrb[4].mxu1 }
  0xe8   :  { %329 = vst.msk [vmem:[%s674_s3 + $0xc] sm:$0xf] %vm325_vm1, %v388_v45  ;;  %339 = vst.msk [vmem:[%s674_s3 + $0x34] sm:$0xf] %vm325_vm1, %v398_v46  ;;  %v190_v51 = vadd.f32 %v441_v48, %v579_v24  ;;  %v184_v52 = vpop.f32.mrb[5].mxu0  ;;  %v240_v53 = vadd.f32 %v456_v50, %v579_v24  ;;  %v234_v54 = vpop.f32.mrb[5].mxu1 }
  0xe9   :  { %328 = vst.msk [vmem:[%s674_s3 + $0x8] sm:$0xf] %vm325_vm1, %v387_v47  ;;  %338 = vst.msk [vmem:[%s674_s3 + $0x30] sm:$0xf] %vm325_vm1, %v397_v49  ;;  %v185_v55 = vadd.f32 %v579_v24, %v184_v52  ;;  %v235_v56 = vadd.f32 %v579_v24, %v234_v54 }
  0xea   :  { %v390_v57 = vpack.c.bf16 %v190_v51, %v190_v51  ;;  %v400_v58 = vpack.c.bf16 %v240_v53, %v240_v53 }
  0xeb   :  { %v389_v59 = vpack.c.bf16 %v185_v55, %v185_v55  ;;  %v444_v60 = vpop.f32.mrb[6].mxu0  ;;  %v399_v61 = vpack.c.bf16 %v235_v56, %v235_v56  ;;  %v459_v62 = vpop.f32.mrb[6].mxu1 }
  0xec   :  { %331 = vst.msk [vmem:[%s674_s3 + $0x14] sm:$0xf] %vm325_vm1, %v390_v57  ;;  %341 = vst.msk [vmem:[%s674_s3 + $0x3c] sm:$0xf] %vm325_vm1, %v400_v58  ;;  %v200_v63 = vadd.f32 %v444_v60, %v579_v24  ;;  %v194_v0 = vpop.f32.mrb[7].mxu0  ;;  %v250_v1 = vadd.f32 %v459_v62, %v579_v24  ;;  %v244_v2 = vpop.f32.mrb[7].mxu1 }
  0xed   :  { %330 = vst.msk [vmem:[%s674_s3 + $0x10] sm:$0xf] %vm325_vm1, %v389_v59  ;;  %340 = vst.msk [vmem:[%s674_s3 + $0x38] sm:$0xf] %vm325_vm1, %v399_v61  ;;  %v195_v3 = vadd.f32 %v579_v24, %v194_v0  ;;  %v245_v4 = vadd.f32 %v579_v24, %v244_v2 }
  0xee   :  { %v392_v5 = vpack.c.bf16 %v200_v63, %v200_v63  ;;  %v402_v6 = vpack.c.bf16 %v250_v1, %v250_v1 }
  0xef   :  { %v391_v7 = vpack.c.bf16 %v195_v3, %v195_v3  ;;  %v447_v8 = vpop.f32.mrb[8].mxu0  ;;  %v401_v9 = vpack.c.bf16 %v245_v4, %v245_v4 }
  0xf0   :  { %333 = vst.msk [vmem:[%s674_s3 + $0x1c] sm:$0xf] %vm325_vm1, %v392_v5  ;;  %343 = vst.msk [vmem:[%s674_s3 + $0x44] sm:$0xf] %vm325_vm1, %v402_v6  ;;  %v210_v10 = vadd.f32 %v447_v8, %v579_v24  ;;  %v204_v11 = vpop.f32.mrb[9].mxu0 }
  0xf1   :  { %332 = vst.msk [vmem:[%s674_s3 + $0x18] sm:$0xf] %vm325_vm1, %v391_v7  ;;  %342 = vst.msk [vmem:[%s674_s3 + $0x40] sm:$0xf] %vm325_vm1, %v401_v9  ;;  %v205_v12 = vadd.f32 %v579_v24, %v204_v11 }
  0xf2   :  { %v394_v13 = vpack.c.bf16 %v210_v10, %v210_v10 }
  0xf3   :  { %v393_v14 = vpack.c.bf16 %v205_v12, %v205_v12 }
  0xf4   :  { %335 = vst.msk [vmem:[%s674_s3 + $0x24] sm:$0xf] %vm325_vm1, %v394_v13 }
  0xf5   :  { %334 = vst.msk [vmem:[%s674_s3 + $0x20] sm:$0xf] %vm325_vm1, %v393_v14 }

</bundles_post_ra>
